<compile_context>
chip_gen: v6e
topology: v6e:2x2x1
jax: 0.10.0
libtpu: 0.0.40
codegen_flags: <defaults>
</compile_context>

<pallas_src>
import math

import jax
import jax.numpy as jnp
from jax.experimental import pallas as pl
from jax.experimental.pallas import tpu as pltpu


def _round_up(x, m):
    return (x + m - 1) // m * m


# ----------------------------------------------------------------------------
# Tiled linear kernel: y = x @ W_t + b, W_t already (K, N) so no in-kernel
# transpose.  Grid over (M, N) tiles, K resident in each block (K is small for
# this model: E or H).  Output tiles are lane-dense (tn multiple of 128).
# ----------------------------------------------------------------------------
def _linear_kernel(x_ref, w_ref, b_ref, o_ref):
    o_ref[...] = (jnp.dot(x_ref[...], w_ref[...],
                          preferred_element_type=jnp.float32)
                  + b_ref[...])


def linear(x, w_t, b, *, tm=256, tn=512):
    """x: (N, K) f32, w_t: (K, V) f32 (pre-transposed), b: (V,) -> (N, V) f32."""
    N, K = x.shape
    V = w_t.shape[1]
    tm = min(tm, _round_up(N, 8))
    tn = min(tn, _round_up(V, 128))
    Np = _round_up(N, tm)
    Vp = _round_up(V, tn)

    x_p = x if Np == N else jnp.pad(x, ((0, Np - N), (0, 0)))
    w_p = w_t if Vp == V else jnp.pad(w_t, ((0, 0), (0, Vp - V)))
    b_p = b if Vp == V else jnp.pad(b, (0, Vp - V))
    b_p = b_p.reshape(1, Vp)

    out = pl.pallas_call(
        _linear_kernel,
        out_shape=jax.ShapeDtypeStruct((Np, Vp), jnp.float32),
        grid=(Np // tm, Vp // tn),
        in_specs=[pl.BlockSpec((tm, K), lambda i, j: (i, 0)),
                  pl.BlockSpec((K, tn), lambda i, j: (0, j)),
                  pl.BlockSpec((1, tn), lambda i, j: (0, j))],
        out_specs=pl.BlockSpec((tm, tn), lambda i, j: (i, j)),
        compiler_params=pltpu.CompilerParams(
            dimension_semantics=("parallel", "parallel")),
    )(x_p, w_p, b_p)
    if Np != N or Vp != V:
        out = out[:N, :V]
    return out


# ----------------------------------------------------------------------------
# LSTM recurrence kernel: the input projection (+ combined bias) is already
# precomputed in gates_in (T, B, 4H).  One pallas_call runs the whole time loop
# via lax.fori_loop; per step only h @ W_hh_t (pre-transposed) + gates.
# Gate order (i, f, g, o) matches torch.nn.LSTM.
# ----------------------------------------------------------------------------
def _lstm_recurrence_kernel(gates_in_ref, whh_ref, h0_ref, c0_ref,
                            y_ref, hN_ref, cN_ref, h_sc, c_sc):
    H = h0_ref.shape[-1]
    T = gates_in_ref.shape[0]

    h_sc[...] = h0_ref[...]
    c_sc[...] = c0_ref[...]

    def step(t, carry):
        gates = gates_in_ref[t] + jnp.dot(
            h_sc[...], whh_ref[...], preferred_element_type=jnp.float32)  # (B, 4H)
        i = jax.nn.sigmoid(gates[:, 0 * H:1 * H])
        f = jax.nn.sigmoid(gates[:, 1 * H:2 * H])
        g = jnp.tanh(gates[:, 2 * H:3 * H])
        o = jax.nn.sigmoid(gates[:, 3 * H:4 * H])
        c = f * c_sc[...] + i * g
        h = o * jnp.tanh(c)
        c_sc[...] = c
        h_sc[...] = h
        y_ref[t] = h
        return carry

    jax.lax.fori_loop(0, T, step, 0)

    # Unconditional final-state write (no cold pl.when path).
    hN_ref[...] = h_sc[...]
    cN_ref[...] = c_sc[...]


def lstm_layer(x, w_ih_t, w_hh_t, bias, h0, c0):
    """x: (T, B, E) f32 -> (y (T,B,H), h_N (B,H), c_N (B,H)).

    w_ih_t: (E, 4H), w_hh_t: (H, 4H), bias: (4H,) = b_ih + b_hh (all f32).
    """
    T, B, E = x.shape
    H = h0.shape[-1]

    # Hoisted input projection (+ bias): one big MXU matmul over all T*B rows.
    gates_in = linear(x.reshape(T * B, E), w_ih_t, bias)        # (T*B, 4H)
    gates_in = gates_in.reshape(T, B, 4 * H)

    # TODO(synk): for long sequences / large H, chunk the time axis into grid
    # steps sized to VMEM (and split B across cores on v7x) instead of keeping
    # the whole (T, B, 4H) gates buffer resident.
    return pl.pallas_call(
        _lstm_recurrence_kernel,
        out_shape=(jax.ShapeDtypeStruct((T, B, H), jnp.float32),
                   jax.ShapeDtypeStruct((B, H), jnp.float32),
                   jax.ShapeDtypeStruct((B, H), jnp.float32)),
        in_specs=[pl.BlockSpec(memory_space=pltpu.MemorySpace.VMEM),
                  pl.BlockSpec(memory_space=pltpu.MemorySpace.VMEM),
                  pl.BlockSpec(memory_space=pltpu.MemorySpace.VMEM),
                  pl.BlockSpec(memory_space=pltpu.MemorySpace.VMEM)],
        out_specs=(pl.BlockSpec(memory_space=pltpu.MemorySpace.VMEM),
                   pl.BlockSpec(memory_space=pltpu.MemorySpace.VMEM),
                   pl.BlockSpec(memory_space=pltpu.MemorySpace.VMEM)),
        scratch_shapes=[pltpu.VMEM((B, H), jnp.float32),
                        pltpu.VMEM((B, H), jnp.float32)],
    )(gates_in, w_hh_t, h0, c0)


# ----------------------------------------------------------------------------
# Parameter construction (deterministic; mirrors LanguageModel.__init__ /
# init_weights shapes; nout=None branch -> no proj layer).  Weights are stored
# pre-transposed for lane-dense MXU feeds; LSTM biases are combined once.
# ----------------------------------------------------------------------------
def init_params(key, vocab_size, embedding_size, hidden_size, nlayers):
    ks = jax.random.split(key, 3 + 4 * nlayers)
    initrange = 0.1
    dec_w = jax.random.uniform(
        ks[1], (vocab_size, hidden_size), jnp.float32, -initrange, initrange)
    params = {
        "encoder_weight": jax.random.uniform(
            ks[0], (vocab_size, embedding_size), jnp.float32, -initrange, initrange),
        "decoder_weight_t": dec_w.T,                           # (H, V)
        "decoder_bias": jnp.zeros((vocab_size,), jnp.float32),
        "lstm": [],
    }
    stdv = 1.0 / math.sqrt(hidden_size)      # torch.nn.LSTM default init range
    for layer in range(nlayers):
        in_sz = embedding_size if layer == 0 else hidden_size
        k0, k1, k2, k3 = ks[3 + 4 * layer: 3 + 4 * layer + 4]
        w_ih = jax.random.uniform(k0, (4 * hidden_size, in_sz), jnp.float32, -stdv, stdv)
        w_hh = jax.random.uniform(k1, (4 * hidden_size, hidden_size), jnp.float32, -stdv, stdv)
        b_ih = jax.random.uniform(k2, (4 * hidden_size,), jnp.float32, -stdv, stdv)
        b_hh = jax.random.uniform(k3, (4 * hidden_size,), jnp.float32, -stdv, stdv)
        params["lstm"].append({"w_ih_t": w_ih.T,               # (E or H, 4H)
                               "w_hh_t": w_hh.T,               # (H, 4H)
                               "bias": b_ih + b_hh})           # (4H,)
    return params


# ----------------------------------------------------------------------------
# Full forward pass (== LanguageModel.forward, eval mode).
# ----------------------------------------------------------------------------
def language_model_forward(params, input_ids, hidden):
    """input_ids: (T, B) int32, hidden: ((L,B,H),(L,B,H)) ->
       (decoded (T,B,V), output (T,B,H), (h_n, c_n))"""
    h0_all, c0_all = hidden
    # Encoder (embedding gather) + dropout (identity in eval mode).
    # TODO(synk): fuse the gather into the layer-0 input-projection kernel via
    # scalar-prefetched token ids to skip the (T,B,E) HBM round trip.
    emb = jnp.take(params["encoder_weight"], input_ids, axis=0)   # (T, B, E)

    x = emb
    h_finals, c_finals = [], []
    for layer, lp in enumerate(params["lstm"]):
        x, h_n, c_n = lstm_layer(x, lp["w_ih_t"], lp["w_hh_t"], lp["bias"],
                                 h0_all[layer], c0_all[layer])
        h_finals.append(h_n)
        c_finals.append(c_n)
        # Inter-layer dropout is training-only; identity in eval mode.

    output = x                                                    # (T, B, H)
    T, B, H = output.shape
    decoded_flat = linear(output.reshape(T * B, H),
                          params["decoder_weight_t"], params["decoder_bias"])
    decoded = decoded_flat.reshape(T, B, -1)
    return decoded, output, (jnp.stack(h_finals), jnp.stack(c_finals))


# ----------------------------------------------------------------------------
# Pure-JAX reference for verification.
# ----------------------------------------------------------------------------
def _reference_forward(params, input_ids, hidden):
    h0_all, c0_all = hidden
    emb = jnp.take(params["encoder_weight"], input_ids, axis=0)
    x = emb
    h_fs, c_fs = [], []
    for layer, lp in enumerate(params["lstm"]):
        H = h0_all.shape[-1]

        def step(carry, xt, lp=lp, H=H):
            h, c = carry
            gates = xt @ lp["w_ih_t"] + h @ lp["w_hh_t"] + lp["bias"]
            i = jax.nn.sigmoid(gates[:, 0 * H:1 * H])
            f = jax.nn.sigmoid(gates[:, 1 * H:2 * H])
            g = jnp.tanh(gates[:, 2 * H:3 * H])
            o = jax.nn.sigmoid(gates[:, 3 * H:4 * H])
            c = f * c + i * g
            h = o * jnp.tanh(c)
            return (h, c), h

        (h_n, c_n), ys = jax.lax.scan(step, (h0_all[layer], c0_all[layer]), x)
        x = ys
        h_fs.append(h_n)
        c_fs.append(c_n)
    T, B, H = x.shape
    dec = x.reshape(T * B, H) @ params["decoder_weight_t"] + params["decoder_bias"]
    return dec.reshape(T, B, -1), x, (jnp.stack(h_fs), jnp.stack(c_fs))


if __name__ == "__main__":
    vocab_size = 64
    embedding_size = 32
    hidden_size = 32
    nlayers = 2
    T, B = 8, 2

    key = jax.random.PRNGKey(0)
    k_param, k_ids = jax.random.split(key)
    params = init_params(k_param, vocab_size, embedding_size, hidden_size, nlayers)
    input_ids = jax.random.randint(k_ids, (T, B), 0, vocab_size, dtype=jnp.int32)
    hidden0 = (jnp.zeros((nlayers, B, hidden_size), jnp.float32),
               jnp.zeros((nlayers, B, hidden_size), jnp.float32))

    decoded, output, (h_n, c_n) = jax.block_until_ready(
        language_model_forward(params, input_ids, hidden0))

    # shape checks (match PyTorch forward return conventions)
    assert decoded.shape == (T, B, vocab_size)
    assert output.shape == (T, B, hidden_size)
    assert h_n.shape == (nlayers, B, hidden_size)
    assert c_n.shape == (nlayers, B, hidden_size)

    # numerical check vs pure-JAX reference
    ref_dec, ref_out, (ref_h, ref_c) = _reference_forward(params, input_ids, hidden0)
    assert jnp.allclose(decoded, ref_dec, atol=2e-4, rtol=2e-4)
    assert jnp.allclose(output, ref_out, atol=2e-4, rtol=2e-4)
    assert jnp.allclose(h_n, ref_h, atol=2e-4, rtol=2e-4)
    assert jnp.allclose(c_n, ref_c, atol=2e-4, rtol=2e-4)

    print("KERNEL_OK")
</pallas_src>

<mosaic_0001>
module attributes {stable_mosaic.version = 11 : i64} {
  func.func @_linear_kernel(%arg0: i32, %arg1: i32, %arg2: memref<16x32xf32, #tpu.memory_space<vmem>>, %arg3: memref<32x128xf32, #tpu.memory_space<vmem>>, %arg4: memref<1x128xf32, #tpu.memory_space<vmem>>, %arg5: memref<16x128xf32, #tpu.memory_space<vmem>>) attributes {dimension_semantics = [#tpu.dimension_semantics<parallel>, #tpu.dimension_semantics<parallel>], iteration_bounds = array<i64: 1, 1>, scalar_prefetch = 0 : i64, scratch_operands = 0 : i64, tpu.core_type = #tpu.core_type<tc>, window_params = [{transform_indices = @transform_0, window_bounds = array<i64: 16, 32>}, {transform_indices = @transform_1, window_bounds = array<i64: 32, 128>}, {transform_indices = @transform_2, window_bounds = array<i64: 1, 128>}, {transform_indices = @transform_3, window_bounds = array<i64: 16, 128>}]} {
    %c0 = arith.constant 0 : index
    %c0_0 = arith.constant 0 : index
    %0 = vector.load %arg2[%c0, %c0_0] : memref<16x32xf32, #tpu.memory_space<vmem>>, vector<16x32xf32>
    %c0_1 = arith.constant 0 : index
    %c0_2 = arith.constant 0 : index
    %1 = vector.load %arg3[%c0_1, %c0_2] : memref<32x128xf32, #tpu.memory_space<vmem>>, vector<32x128xf32>
    %cst = arith.constant dense<0.000000e+00> : vector<16x128xf32>
    %2 = tpu.matmul %0, %1, %cst {dimension_numbers = #tpu.dot_dimension_numbers<[1], [0], [0], [1], [0, 0, 1, 1], [], []>} : vector<16x32xf32>, vector<32x128xf32>, vector<16x128xf32> -> vector<16x128xf32>
    %c0_3 = arith.constant 0 : index
    %c0_4 = arith.constant 0 : index
    %3 = vector.load %arg4[%c0_3, %c0_4] : memref<1x128xf32, #tpu.memory_space<vmem>>, vector<1x128xf32>
    %4 = vector.broadcast %3 : vector<1x128xf32> to vector<16x128xf32>
    %5 = arith.addf %2, %4 : vector<16x128xf32>
    %c0_5 = arith.constant 0 : index
    %c0_6 = arith.constant 0 : index
    %6 = vector.load %arg5[%c0_5, %c0_6] : memref<16x128xf32, #tpu.memory_space<vmem>>, vector<16x128xf32>
    tpu.vector_store %arg5[%c0_5, %c0_6], %5 {strides = array<i32>} : memref<16x128xf32, #tpu.memory_space<vmem>>, vector<16x128xf32>,
    return
  }
  func.func @transform_0(%arg0: i32, %arg1: i32) -> (i32, i32) {
    %c0_i32 = arith.constant 0 : i32
    %c0_i32_0 = arith.constant 0 : i32
    return %arg0, %c0_i32 : i32, i32
  }
  func.func @transform_1(%arg0: i32, %arg1: i32) -> (i32, i32) {
    %c0_i32 = arith.constant 0 : i32
    %c0_i32_0 = arith.constant 0 : i32
    return %c0_i32, %arg1 : i32, i32
  }
  func.func @transform_2(%arg0: i32, %arg1: i32) -> (i32, i32) {
    %c0_i32 = arith.constant 0 : i32
    %c0_i32_0 = arith.constant 0 : i32
    return %c0_i32, %arg1 : i32, i32
  }
  func.func @transform_3(%arg0: i32, %arg1: i32) -> (i32, i32) {
    %c0_i32 = arith.constant 0 : i32
    return %arg0, %arg1 : i32, i32
  }
}

</mosaic_0001>

<bundles_post_ra>
// kernel: tpu_custom_call.1
= control target key start
LH: loop header
LB: loop body
LE: loop exit
PB: predicated region body
PF: predicated region fallthrough
CT: control target
= control target key end

     0   :  { %8 = vsyncpa [#allocation3], 0  ;;  %s297_s0 = inlined_call_operand.hbm [shape: f32[16,32], index: 0, kind: input, shape index: {}]   ;;  %s298_s1 = inlined_call_operand.hbm [shape: f32[32,128], index: 1, kind: input, shape index: {}]   ;;  %s299_s2 = inlined_call_operand.vmem [shape: f32[1,128], index: 2, kind: input, shape index: {}]   ;;  %s300_s3 = inlined_call_operand.hbm [shape: f32[16,128], index: 3, kind: output, shape index: {}]  }
   0x1   :  { %9 = vsyncpa [#allocation6], 0 }
   0x2   :  { %10 = vsyncpa [#allocation4], 0  ;;  %s249_s12 = smov [#allocation2]  }
   0x3   :  { %s16_s13 = sshll.u32 %s249_s12, 4  ;;  %s17_s13 = int_to_ptr.vmem [resolvable:$true] %s16_s13 }
   0x4   :  { %s191_s14 = scalar_lea.vmem %s17_s13, 256  ;;  %p196_p1 = scmp.lt.s32.totalorder %s17_s13, %s17_s13 }
   0x5   :  { %p192_p0 = scmp.ne.s32.totalorder %s17_s13, %s191_s14  ;;  %p197_p2 = scmp.lt.s32.totalorder %s191_s14, %s191_s14 }
   0x7   :  { %p198_p3 = por %p197_p2, %p196_p1 }
   0x9   :  { %p199_p4 = pnand %p198_p3, %p192_p0 }
   0xb   :  { %202 = shalt.err (!%p199_p4)
}
   0xc   :  { %s250_s15 = smov 128   ;;  %s251_s16 = smov 8  }
   0xd   :  { %22 = dma.hbm_to_vmem [thread:$0]  %s297_s0, 256, %s17_s13, [#allocation3], %s250_s15, %s250_s15, %s251_s16  }
   0xe   :  { %s252_s19 = smov [#allocation5]  }
   0xf   :  { %s28_s20 = sshll.u32 %s252_s19, 4  ;;  %s29_s20 = int_to_ptr.vmem [resolvable:$true] %s28_s20 }
  0x10   :  { %s211_s21 = scalar_lea.vmem %s29_s20, 512  ;;  %p216_p6 = scmp.lt.s32.totalorder %s29_s20, %s29_s20 }
  0x11   :  { %p212_p5 = scmp.ne.s32.totalorder %s29_s20, %s211_s21  ;;  %p217_p7 = scmp.lt.s32.totalorder %s211_s21, %s211_s21 }
  0x13   :  { %p218_p8 = por %p217_p7, %p216_p6 }
  0x15   :  { %p219_p9 = pnand %p218_p8, %p212_p5 }
  0x17   :  { %222 = shalt.err (!%p219_p9)
}
  0x18   :  { %34 = dma.hbm_to_vmem [thread:$0]  %s298_s1, 512, %s29_s20, [#allocation6], %s250_s15, %s250_s15, %s251_s16  }
  0x19   :  { %243 = dma.done.wait [#allocation3], 256  }
  0x1a   :  { %244 = vsyncadd [#allocation3], 4294967040 }
  0x1b   :  { %245 = dma.done.wait [#allocation6], 512  }
  0x1c   :  { %246 = vsyncadd [#allocation6], 4294966784  ;;  %vm56_vm0 = vcmask 261120   ;;  %v48_v0 = vld [vmem:[#allocation5 + $0x18] sm:$0xff]  ;;  %v47_v1 = vld [vmem:[#allocation5 + $0x10] sm:$0xff]  ;;  %s253_s24 = smov [#allocation7]  }
  0x1d   :  { %167 = vmatprep.subr.mxu0 %v48_v0  ;;  %v43_v2 = vld [vmem:[#allocation2] sm:$0xff]  ;;  %v46_v3 = vld [vmem:[#allocation5 + $0x8] sm:$0xff]  ;;  %v45_v4 = vld [vmem:[#allocation5] sm:$0xff]  ;;  %s145_s25 = sshll.u32 %s253_s24, 4  ;;  %s146_s25 = int_to_ptr.vmem [resolvable:$true] %s145_s25 }
  0x1e   :  { %168 = vmatpush3.msra.mxu0 %v48_v0  ;;  %175 = vmatprep.mubr.msk.f32.mxu0 %vm56_vm0, %v43_v2  ;;  %v44_v5 = vld [vmem:[#allocation2 + $0x8] sm:$0xff]  ;;  %v158_v6 = vld [vmem:[%s299_s2] ss:$0 sm:$0xff]  ;;  %s223_s26 = scalar_lea.vmem %s146_s25, 256  ;;  %p228_p11 = scmp.lt.s32.totalorder %s146_s25, %s146_s25 }
  0x1f   :  { %169 = vmatprep.subr.mxu0 %v47_v1  ;;  %p224_p10 = scmp.ne.s32.totalorder %s146_s25, %s223_s26  ;;  %p229_p12 = scmp.lt.s32.totalorder %s223_s26, %s223_s26 }
  0x20   :  { %170 = vmatpush3.msra.mxu0 %v47_v1 }
  0x21   :  { %171 = vmatprep.subr.mxu0 %v46_v3  ;;  %p230_p13 = por %p229_p12, %p228_p11 }
  0x22   :  { %172 = vmatpush3.msra.mxu0 %v46_v3 }
  0x23   :  { %173 = vmatprep.subr.mxu0 %v45_v4  ;;  %p231_p0 = pnand %p230_p13, %p224_p10 }
  0x24   :  { %174 = vmatpush3.msra.mxu0 %v45_v4 }
  0x25   :  { %176 = vmatmul.mubr.msk.f32.vlgmr.msra.gmra.mxu0 %vm56_vm0, %v44_v5 }
  0xe5   :  { %v177_v7 = vpop.f32.mrf.mxu0 }
  0xe6   :  { %v135_v8 = vadd.f32 %v177_v7, %v158_v6 }
  0xe7   :  { %v129_v9 = vpop.f32.mrf.mxu0 }
  0xe8   :  { %139 = vst [vmem:[#allocation7 + $0x8] sm:$0xff] %v135_v8  ;;  %v130_v10 = vadd.f32 %v158_v6, %v129_v9 }
  0xea   :  { %138 = vst [vmem:[#allocation7] sm:$0xff] %v130_v10 }
  0xeb   :  { %234 = shalt.err (!%p231_p0)
}
  0xec   :  { %151 = dma.vmem_to_hbm [thread:$0]  %s146_s25, 256, %s300_s3, [#allocation4], %s250_s15, %s250_s15, %s251_s16  }
  0xed   :  { %247 = dma.done.wait [#allocation4], 256  }
  0xee   :  { %248 = vsyncadd [#allocation4], 4294967040 }
  0xef   :  { %155 = vsyncpa [#allocation3], 1 }
  0xf0   :  { %156 = vsyncpa [#allocation6], 1 }
  0xf1   :  { %157 = vsyncpa [#allocation4], 1 }

</bundles_post_ra>
